<compile_context>
chip_gen: v7x
topology: tpu7x:2x2x1
jax: 0.10.0
libtpu: 0.0.40
codegen_flags: <defaults>
</compile_context>

<pallas_src>
import functools

import jax
import jax.numpy as jnp
from jax.experimental import pallas as pl
from jax.experimental.pallas import tpu as pltpu


LANE = 128  # TPU lane width; pad feature dims to multiples of this.


def _round_up(n, m):
    return ((n + m - 1) // m) * m


# ---------------------------------------------------------------------------
# Kernel
# ---------------------------------------------------------------------------
def _linearnet_kernel(x_ref, w1_ref, b1_ref, w2_ref, b2_ref, w3_ref, b3_ref, o_ref):
    # One batch tile per grid step; weights/biases are whole-array VMEM residents.
    #   h1 = relu(x @ W1 + b1); h2 = relu(h1 @ W2 + b2); z = h2 @ W3 + b3
    #   out = log_softmax(z).  Padded class lanes carry b3 = -1e30 -> exp() == 0.
    # bf16 operands on the MXU, f32 accumulation via preferred_element_type.
    x = x_ref[...]

    h1 = jnp.dot(x, w1_ref[...], preferred_element_type=jnp.float32) + b1_ref[...]
    h1 = jnp.maximum(h1, 0.0)

    h2 = jnp.dot(h1.astype(w2_ref.dtype), w2_ref[...],
                 preferred_element_type=jnp.float32) + b2_ref[...]
    h2 = jnp.maximum(h2, 0.0)

    z = jnp.dot(h2.astype(w3_ref.dtype), w3_ref[...],
                preferred_element_type=jnp.float32) + b3_ref[...]

    # Numerically stable log_softmax along the class axis (padded lanes contribute 0).
    z_max = jnp.max(z, axis=1, keepdims=True)
    shifted = z - z_max
    lse = jnp.log(jnp.sum(jnp.exp(shifted), axis=1, keepdims=True))
    o_ref[...] = (shifted - lse).astype(o_ref.dtype)


# ---------------------------------------------------------------------------
# Parameter prep
# ---------------------------------------------------------------------------
def pad_linearnet_params(w1, b1, w2, b2, w3, b3, *, weight_dtype=jnp.bfloat16):
    """Zero-pad hidden/class dims to multiples of 128 and cast weights to bf16.

    Weights are [in, out] (already transposed vs. PyTorch's [out, in]); biases are [out]
    and stay f32 (added after the f32-accumulated MXU dot).
    Padding is exact: padded W1/W2 columns produce relu(0)=0 activations, padded W2/W3
    rows multiply those zeros.  The class-padding mask is folded into b3: padded lanes of
    b3p are -1e30, so padded logits underflow to 0 in the kernel's logsumexp.
    NOTE: this makes b3p specific to this kernel (a plain x@W3+b3 reference using it would
    see -1e30 logits in padded columns — harmless here, but documented).
    """
    in_sz, h1 = w1.shape
    _, h2 = w2.shape
    _, nc = w3.shape
    h1p, h2p, ncp = _round_up(h1, LANE), _round_up(h2, LANE), _round_up(nc, LANE)

    w1p = jnp.zeros((in_sz, h1p), weight_dtype).at[:, :h1].set(w1.astype(weight_dtype))
    b1p = jnp.zeros((1, h1p), jnp.float32).at[0, :h1].set(b1.reshape(-1))
    w2p = jnp.zeros((h1p, h2p), weight_dtype).at[:h1, :h2].set(w2.astype(weight_dtype))
    b2p = jnp.zeros((1, h2p), jnp.float32).at[0, :h2].set(b2.reshape(-1))
    w3p = jnp.zeros((h2p, ncp), weight_dtype).at[:h2, :nc].set(w3.astype(weight_dtype))
    b3p = jnp.full((1, ncp), -1e30, jnp.float32).at[0, :nc].set(b3.reshape(-1))
    return (w1p, b1p, w2p, b2p, w3p, b3p), nc


# ---------------------------------------------------------------------------
# pallas_call wrapper
# ---------------------------------------------------------------------------
@functools.partial(jax.jit, static_argnames=("tile_b",))
def _linearnet_forward_impl(x, w1, b1, w2, b2, w3, b3, *, tile_b):
    B, in_sz = x.shape
    c_pad = w3.shape[1]
    # Ragged batches: last block overhangs (reads garbage, writes masked) — no jnp.pad copy.
    grid = (pl.cdiv(B, tile_b),)

    # Weights/biases: whole-array VMEM residents (no per-step re-DMA / double-buffering).
    resident = pl.BlockSpec(memory_space=pltpu.MemorySpace.VMEM)

    return pl.pallas_call(
        _linearnet_kernel,
        out_shape=jax.ShapeDtypeStruct((B, c_pad), jnp.float32),
        grid=grid,
        in_specs=[
            pl.BlockSpec((tile_b, in_sz), lambda i: (i, 0)),  # x: pipelined batch tiles
            resident, resident,                                # W1, b1
            resident, resident,                                # W2, b2
            resident, resident,                                # W3, b3
        ],
        out_specs=pl.BlockSpec((tile_b, c_pad), lambda i: (i, 0)),
        compiler_params=pltpu.CompilerParams(
            dimension_semantics=("parallel",),      # megacore sharding on v7x
            vmem_limit_bytes=40 * 1024 * 1024,       # large tiles exceed v5e's 16 MiB default
        ),
    )(x, w1, b1, w2, b2, w3, b3)


def _pick_tile_b(batch, requested):
    """Keep >=4 grid steps when the batch allows it (>=2 per TensorCore on v7x)."""
    cap = _round_up(max(batch // 4, 1), 8)
    return _round_up(max(8, min(requested, cap)), 8)


def linearnet_forward(x, padded_params, num_classes, *, tile_b=1024):
    """x: [B, in_sz]. padded_params from pad_linearnet_params. Returns [B, num_classes] f32.

    For best performance callers should pass x already in bf16 (saves the cast pass).
    """
    if x.dtype != jnp.bfloat16:
        x = x.astype(jnp.bfloat16)   # halves the dominant x HBM read inside the kernel
    tb = _pick_tile_b(x.shape[0], tile_b)
    out = _linearnet_forward_impl(x, *padded_params, tile_b=tb)
    return out[:, :num_classes]


# ---------------------------------------------------------------------------
# References + init (mirrors nn.Linear defaults, deterministic)
# ---------------------------------------------------------------------------
def _init_linear_params(key, in_features, out_features):
    """nn.Linear default init U(-1/sqrt(fan_in), 1/sqrt(fan_in)); W returned as [in, out]."""
    k_w, k_b = jax.random.split(key)
    bound = 1.0 / jnp.sqrt(jnp.float32(in_features))
    w = jax.random.uniform(k_w, (in_features, out_features), jnp.float32, -bound, bound)
    b = jax.random.uniform(k_b, (out_features,), jnp.float32, -bound, bound)
    return w, b


def reference_forward_f32(x, w1, b1, w2, b2, w3, b3):
    """Exact PyTorch-semantics (all-f32) reference."""
    h1 = jax.nn.relu(x @ w1 + b1)
    h2 = jax.nn.relu(h1 @ w2 + b2)
    z = h2 @ w3 + b3
    return jax.nn.log_softmax(z, axis=1)


def reference_forward_bf16(x, padded_params, num_classes):
    """Same arithmetic as the kernel (bf16 operands, f32 accumulation) — tight check."""
    w1p, b1p, w2p, b2p, w3p, b3p = padded_params
    xb = x.astype(jnp.bfloat16)
    h1 = jax.nn.relu(jnp.dot(xb, w1p, preferred_element_type=jnp.float32) + b1p)
    h2 = jax.nn.relu(jnp.dot(h1.astype(jnp.bfloat16), w2p,
                             preferred_element_type=jnp.float32) + b2p)
    z = jnp.dot(h2.astype(jnp.bfloat16), w3p, preferred_element_type=jnp.float32) + b3p
    return jax.nn.log_softmax(z, axis=1)[:, :num_classes]


if __name__ == "__main__":
    in_sz, layers, out_in = 784, [120, 84], 10

    root = jax.random.PRNGKey(0)
    k_x, k_x2, k_x3, k1, k2, k3 = jax.random.split(root, 6)

    w1, b1 = _init_linear_params(k1, in_sz, layers[0])
    w2, b2 = _init_linear_params(k2, layers[0], layers[1])
    w3, b3 = _init_linear_params(k3, layers[1], out_in)
    padded_params, num_classes = pad_linearnet_params(w1, b1, w2, b2, w3, b3)

    def check(x, batch):
        out = jax.block_until_ready(linearnet_forward(x, padded_params, num_classes))
        assert out.shape == (batch, out_in)
        # Tight check vs. an identical-arithmetic (bf16 operand / f32 accum) reference.
        ref_bf16 = reference_forward_bf16(x, padded_params, num_classes)
        assert jnp.allclose(out, ref_bf16, atol=2e-3, rtol=2e-3), "mismatch vs bf16 reference"
        # Loose check vs. the exact all-f32 PyTorch-semantics reference.
        ref_f32 = reference_forward_f32(x, w1, b1, w2, b2, w3, b3)
        assert jnp.allclose(out, ref_f32, atol=5e-2, rtol=5e-2), "mismatch vs f32 reference"
        # log_softmax self-normalization is exact in f32.
        assert jnp.allclose(jnp.sum(jnp.exp(out), axis=1), 1.0, atol=1e-4)

    # Case 1: batch divisible by the tile -> multi-step pipelined grid (tile auto-capped to 16).
    check(jax.random.normal(k_x, (64, in_sz), jnp.float32), 64)

    # Case 2: ragged batch -> last grid block overhangs (masked writes), no jnp.pad copy.
    check(jax.random.normal(k_x2, (50, in_sz), jnp.float32), 50)

    # Case 3: larger batch -> bigger tile (128), 4-step grid sharded across TCs on v7x.
    check(jax.random.normal(k_x3, (512, in_sz), jnp.float32), 512)

    print("KERNEL_OK")
</pallas_src>

<mosaic_0001>
module attributes {stable_mosaic.version = 11 : i64} {
  func.func @_linearnet_kernel(%arg0: i32, %arg1: memref<16x784xbf16, #tpu.memory_space<vmem>>, %arg2: memref<784x128xbf16, #tpu.memory_space<vmem>>, %arg3: memref<1x128xf32, #tpu.memory_space<vmem>>, %arg4: memref<128x128xbf16, #tpu.memory_space<vmem>>, %arg5: memref<1x128xf32, #tpu.memory_space<vmem>>, %arg6: memref<128x128xbf16, #tpu.memory_space<vmem>>, %arg7: memref<1x128xf32, #tpu.memory_space<vmem>>, %arg8: memref<16x128xf32, #tpu.memory_space<vmem>>) attributes {dimension_semantics = [#tpu.dimension_semantics<parallel>], iteration_bounds = array<i64: 4>, scalar_prefetch = 0 : i64, scratch_operands = 0 : i64, tpu.core_type = #tpu.core_type<tc>, window_params = [{transform_indices = @transform_0, window_bounds = array<i64: 16, 784>}, {pipeline_mode = #tpu.pipeline_mode<synchronous>, transform_indices = @transform_1, window_bounds = array<i64: 784, 128>}, {pipeline_mode = #tpu.pipeline_mode<synchronous>, transform_indices = @transform_2, window_bounds = array<i64: 1, 128>}, {pipeline_mode = #tpu.pipeline_mode<synchronous>, transform_indices = @transform_3, window_bounds = array<i64: 128, 128>}, {pipeline_mode = #tpu.pipeline_mode<synchronous>, transform_indices = @transform_4, window_bounds = array<i64: 1, 128>}, {pipeline_mode = #tpu.pipeline_mode<synchronous>, transform_indices = @transform_5, window_bounds = array<i64: 128, 128>}, {pipeline_mode = #tpu.pipeline_mode<synchronous>, transform_indices = @transform_6, window_bounds = array<i64: 1, 128>}, {transform_indices = @transform_7, window_bounds = array<i64: 16, 128>}]} {
    %c0 = arith.constant 0 : index
    %c0_0 = arith.constant 0 : index
    %0 = vector.load %arg1[%c0, %c0_0] : memref<16x784xbf16, #tpu.memory_space<vmem>>, vector<16x784xbf16>
    %c0_1 = arith.constant 0 : index
    %c0_2 = arith.constant 0 : index
    %1 = vector.load %arg2[%c0_1, %c0_2] : memref<784x128xbf16, #tpu.memory_space<vmem>>, vector<784x128xbf16>
    %cst = arith.constant dense<0.000000e+00> : vector<16x128xf32>
    %2 = tpu.matmul %0, %1, %cst {dimension_numbers = #tpu.dot_dimension_numbers<[1], [0], [0], [1], [0, 0, 1, 1], [], []>} : vector<16x784xbf16>, vector<784x128xbf16>, vector<16x128xf32> -> vector<16x128xf32>
    %c0_3 = arith.constant 0 : index
    %c0_4 = arith.constant 0 : index
    %3 = vector.load %arg3[%c0_3, %c0_4] : memref<1x128xf32, #tpu.memory_space<vmem>>, vector<1x128xf32>
    %4 = vector.broadcast %3 : vector<1x128xf32> to vector<16x128xf32>
    %5 = arith.addf %2, %4 : vector<16x128xf32>
    %cst_5 = arith.constant 0.000000e+00 : f32
    %6 = vector.broadcast %cst_5 : f32 to vector<16x128xf32>
    %7 = arith.maximumf %5, %6 : vector<16x128xf32>
    %8 = arith.truncf %7 : vector<16x128xf32> to vector<16x128xbf16>
    %c0_6 = arith.constant 0 : index
    %c0_7 = arith.constant 0 : index
    %9 = vector.load %arg4[%c0_6, %c0_7] : memref<128x128xbf16, #tpu.memory_space<vmem>>, vector<128x128xbf16>
    %cst_8 = arith.constant dense<0.000000e+00> : vector<16x128xf32>
    %10 = tpu.matmul %8, %9, %cst_8 {dimension_numbers = #tpu.dot_dimension_numbers<[1], [0], [0], [1], [0, 0, 1, 1], [], []>} : vector<16x128xbf16>, vector<128x128xbf16>, vector<16x128xf32> -> vector<16x128xf32>
    %c0_9 = arith.constant 0 : index
    %c0_10 = arith.constant 0 : index
    %11 = vector.load %arg5[%c0_9, %c0_10] : memref<1x128xf32, #tpu.memory_space<vmem>>, vector<1x128xf32>
    %12 = vector.broadcast %11 : vector<1x128xf32> to vector<16x128xf32>
    %13 = arith.addf %10, %12 : vector<16x128xf32>
    %cst_11 = arith.constant 0.000000e+00 : f32
    %14 = vector.broadcast %cst_11 : f32 to vector<16x128xf32>
    %15 = arith.maximumf %13, %14 : vector<16x128xf32>
    %16 = arith.truncf %15 : vector<16x128xf32> to vector<16x128xbf16>
    %c0_12 = arith.constant 0 : index
    %c0_13 = arith.constant 0 : index
    %17 = vector.load %arg6[%c0_12, %c0_13] : memref<128x128xbf16, #tpu.memory_space<vmem>>, vector<128x128xbf16>
    %cst_14 = arith.constant dense<0.000000e+00> : vector<16x128xf32>
    %18 = tpu.matmul %16, %17, %cst_14 {dimension_numbers = #tpu.dot_dimension_numbers<[1], [0], [0], [1], [0, 0, 1, 1], [], []>} : vector<16x128xbf16>, vector<128x128xbf16>, vector<16x128xf32> -> vector<16x128xf32>
    %c0_15 = arith.constant 0 : index
    %c0_16 = arith.constant 0 : index
    %19 = vector.load %arg7[%c0_15, %c0_16] : memref<1x128xf32, #tpu.memory_space<vmem>>, vector<1x128xf32>
    %20 = vector.broadcast %19 : vector<1x128xf32> to vector<16x128xf32>
    %21 = arith.addf %18, %20 : vector<16x128xf32>
    %cst_17 = arith.constant dense<0xFF800000> : vector<16xf32>
    %22 = vector.multi_reduction <maximumf>, %21, %cst_17 [1] : vector<16x128xf32> to vector<16xf32>
    %23 = vector.shape_cast %22 : vector<16xf32> to vector<16x1xf32>
    %24 = vector.broadcast %23 : vector<16x1xf32> to vector<16x128xf32>
    %25 = arith.subf %21, %24 : vector<16x128xf32>
    %26 = math.exp %25 : vector<16x128xf32>
    %cst_18 = arith.constant dense<0.000000e+00> : vector<16xf32>
    %27 = vector.multi_reduction <add>, %26, %cst_18 [1] : vector<16x128xf32> to vector<16xf32>
    %28 = vector.shape_cast %27 : vector<16xf32> to vector<16x1xf32>
    %29 = math.log %28 : vector<16x1xf32>
    %30 = vector.broadcast %29 : vector<16x1xf32> to vector<16x128xf32>
    %31 = arith.subf %25, %30 : vector<16x128xf32>
    %c0_19 = arith.constant 0 : index
    %c0_20 = arith.constant 0 : index
    %32 = vector.load %arg8[%c0_19, %c0_20] : memref<16x128xf32, #tpu.memory_space<vmem>>, vector<16x128xf32>
    tpu.vector_store %arg8[%c0_19, %c0_20], %31 {strides = array<i32>} : memref<16x128xf32, #tpu.memory_space<vmem>>, vector<16x128xf32>,
    return
  }
  func.func @transform_0(%arg0: i32) -> (i32, i32) {
    %c0_i32 = arith.constant 0 : i32
    %c0_i32_0 = arith.constant 0 : i32
    return %arg0, %c0_i32 : i32, i32
  }
  func.func @transform_1(%arg0: i32) -> (i32, i32) {
    %c0_i32 = arith.constant 0 : i32
    %c0_i32_0 = arith.constant 0 : i32
    %c0_i32_1 = arith.constant 0 : i32
    return %c0_i32, %c0_i32_0 : i32, i32
  }
  func.func @transform_2(%arg0: i32) -> (i32, i32) {
    %c0_i32 = arith.constant 0 : i32
    %c0_i32_0 = arith.constant 0 : i32
    %c0_i32_1 = arith.constant 0 : i32
    return %c0_i32, %c0_i32_0 : i32, i32
  }
  func.func @transform_3(%arg0: i32) -> (i32, i32) {
    %c0_i32 = arith.constant 0 : i32
    %c0_i32_0 = arith.constant 0 : i32
    %c0_i32_1 = arith.constant 0 : i32
    return %c0_i32, %c0_i32_0 : i32, i32
  }
  func.func @transform_4(%arg0: i32) -> (i32, i32) {
    %c0_i32 = arith.constant 0 : i32
    %c0_i32_0 = arith.constant 0 : i32
    %c0_i32_1 = arith.constant 0 : i32
    return %c0_i32, %c0_i32_0 : i32, i32
  }
  func.func @transform_5(%arg0: i32) -> (i32, i32) {
    %c0_i32 = arith.constant 0 : i32
    %c0_i32_0 = arith.constant 0 : i32
    %c0_i32_1 = arith.constant 0 : i32
    return %c0_i32, %c0_i32_0 : i32, i32
  }
  func.func @transform_6(%arg0: i32) -> (i32, i32) {
    %c0_i32 = arith.constant 0 : i32
    %c0_i32_0 = arith.constant 0 : i32
    %c0_i32_1 = arith.constant 0 : i32
    return %c0_i32, %c0_i32_0 : i32, i32
  }
  func.func @transform_7(%arg0: i32) -> (i32, i32) {
    %c0_i32 = arith.constant 0 : i32
    %c0_i32_0 = arith.constant 0 : i32
    return %arg0, %c0_i32 : i32, i32
  }
}

</mosaic_0001>

<bundles_post_ra>
// kernel: _linearnet_forward_impl.1
= control target key start
LH: loop header
LB: loop body
LE: loop exit
PB: predicated region body
PF: predicated region fallthrough
CT: control target
= control target key end

     0   :  { %12 = vsyncpa [#allocation3], 0  ;;  %s2273_s0 = inlined_call_operand.hbm [shape: bf16[64,784], index: 0, kind: input, shape index: {}]   ;;  %s2274_s1 = inlined_call_operand.hbm [shape: bf16[784,128], index: 1, kind: input, shape index: {}]   ;;  %s2275_s2 = inlined_call_operand.vmem [shape: f32[1,128], index: 2, kind: input, shape index: {}]   ;;  %s2276_s3 = inlined_call_operand.hbm [shape: bf16[128,128], index: 3, kind: input, shape index: {}]   ;;  %s2277_s4 = inlined_call_operand.vmem [shape: f32[1,128], index: 4, kind: input, shape index: {}]   ;;  %s2278_s5 = inlined_call_operand.hbm [shape: bf16[128,128], index: 5, kind: input, shape index: {}]   ;;  %s2279_s6 = inlined_call_operand.vmem [shape: f32[1,128], index: 6, kind: input, shape index: {}]   ;;  %s2280_s7 = inlined_call_operand.hbm [shape: f32[64,128], index: 7, kind: output, shape index: {}]  }
   0x1   :  { %14 = vsyncpa [#allocation3 + $0x1], 0 }
   0x2   :  { %15 = vsyncpa [#allocation6], 0 }
   0x3   :  { %16 = vsyncpa [#allocation9], 0 }
   0x4   :  { %17 = vsyncpa [#allocation4], 0 }
   0x5   :  { %19 = vsyncpa [#allocation4 + $0x1], 0  ;;  %s1965_s24 = smov 0   ;;  %s1967_s25 = smov 0  }
   0x6   :  { %s1969_s26 = smov 0   ;;  %s1971_s27 = smov 0  }
   0x7 LB: > { %s1986_s28 = sadd.s32 4294967295, %s1910_s27   ;;  %s1323_s29 = sadd.s32 4294967294, %s1910_s27   ;;  %s1910_s27 = sphi %s1971_s27, %s2305_s27   ;;  %s1906_s26 = sphi %s1969_s26, %s2304_s26   ;;  %s1902_s25 = sphi %s1967_s25, %s2303_s25   ;;  %s1898_s24 = sphi %s1965_s24, %s2302_s24  }
   0x8   : > { %p45_p0 = scmp.ne.s32.totalorder %s1902_s25, %s1898_s24  ;;  %p2281_p1 = scmp.eq.s32.totalorder %s1986_s28, 0 }
   0x9   : > { %p201_p3 = scmp.eq.s32.totalorder %s1323_s29, 3  ;;  %p1324_p5 = scmp.ge.s32.totalorder %s1910_s27, 1 }
   0xa   : > { %p1995_p4 = por %p2281_p1, %p45_p0  ;;  %p208_p7 = scmp.lt.s32.totalorder %s1910_s27, 5 }
   0xb   : > { %p2000_p6 = por %p201_p3, %p45_p0  ;;  %s1912_s10 = smov [#allocation5]  }
   0xc   : > { %s2285_s30 = scalar_select %p1995_p4, 1, 0 }
   0xd   : > { %s2286_s8 = scalar_select %p2000_p6, 1, 0 }
   0xe   : > { %p2005_p8 = pnand %p1324_p5, %p208_p7  ;;  %s220_s11 = sshll.u32 %s1912_s10, 4  ;;  %s2009_s11 = int_to_ptr.vmem [resolvable:$true] %s220_s11 }
   0xf   : > { %2287 = sst [smem:[#allocation15_spill]] %s2286_s8  ;;  %s1913_s13 = smov [#allocation7]  }
  0x10   : > { %s2288_s9 = scalar_select %p2005_p8, 1, 0 }
  0x11   : > { %p1570_p9 = pneg %p2005_p8  ;;  %s236_s14 = sshll.u32 %s1913_s13, 4  ;;  %s2019_s14 = int_to_ptr.vmem [resolvable:$true] %s236_s14 }
  0x12   : > { %s1914_s15 = smov [#allocation8]   ;;  %s1722_s19 = scalar_lea.hbm %s2274_s1, 6272 }
  0x13   : > { %p2015_p10 = pnand %p1570_p9, %p2281_p1  ;;  %s2021_s16 = sshll.u32 %s1914_s15, 4  ;;  %s253_s16 = int_to_ptr.vmem [resolvable:$true] %s2021_s16 }
  0x14   : > { %p1723_p11 = scmp.ne.s32.totalorder %s2274_s1, %s1722_s19  ;;  %p1729_p3 = scmp.lt.u32.totalorder %s1722_s19, %s2274_s1 }
  0x15   : > { %p2031_p12 = pneg %p2015_p10 }
  0x17   : > { %p1725_p13 = pnand %p2031_p12, %p1723_p11 }
  0x19   : > { %p1726_p0 = pneg %p1725_p13 }
  0x1b   : > { %p1731_p5 = pnand %p1729_p3, %p1726_p0 }
  0x1d   : > { %1734 = shalt.err (!%p1731_p5)
}
  0x1e   : > { %s1735_s10 = scalar_lea.vmem %s2009_s11, 6272  ;;  %p1743_p2 = scmp.lt.s32.totalorder %s2009_s11, %s2009_s11 }
  0x1f   : > { %p1736_p7 = scmp.ne.s32.totalorder %s2009_s11, %s1735_s10  ;;  %p1744_p6 = scmp.lt.s32.totalorder %s1735_s10, %s1735_s10 }
  0x21   : > { %p1738_p9 = pnand %p1736_p7, %p2031_p12  ;;  %p1745_p11 = por %p1744_p6, %p1743_p2 }
  0x23   : > { %p1739_p1 = pneg %p1738_p9 }
  0x25   : > { %p1746_p13 = pnand %p1745_p11, %p1739_p1 }
  0x27   : > { %1749 = shalt.err (!%p1746_p13)
}
  0x28   : > { %s1915_s13 = smov 64   ;;  %s1916_s15 = smov 4  }
  0x29   : > { %1573 = dma.hbm_to_vmem [thread:$0]  (!%p2015_p10), %s2274_s1, 6272, %s2009_s11, [#allocation6], %s1915_s13, %s1915_s13, %s1916_s15  }
  0x2a   : > { %s1750_s21 = scalar_lea.hbm %s2276_s3, 1024 }
  0x2b   : > { %p1751_p1 = scmp.ne.s32.totalorder %s2276_s3, %s1750_s21  ;;  %p1757_p0 = scmp.lt.u32.totalorder %s1750_s21, %s2276_s3 }
  0x2d   : > { %p1753_p2 = pnand %p1751_p1, %p2031_p12 }
  0x2f   : > { %p1754_p6 = pneg %p1753_p2 }
  0x31   : > { %p1759_p3 = pnand %p1757_p0, %p1754_p6 }
  0x33   : > { %1762 = shalt.err (!%p1759_p3)
}
  0x34   : > { %s1763_s11 = scalar_lea.vmem %s2019_s14, 1024  ;;  %p1771_p11 = scmp.lt.s32.totalorder %s2019_s14, %s2019_s14 }
  0x35   : > { %p1764_p5 = scmp.ne.s32.totalorder %s2019_s14, %s1763_s11  ;;  %p1772_p13 = scmp.lt.s32.totalorder %s1763_s11, %s1763_s11 }
  0x37   : > { %p1766_p7 = pnand %p1764_p5, %p2031_p12  ;;  %p1773_p1 = por %p1772_p13, %p1771_p11 }
  0x39   : > { %p1767_p9 = pneg %p1766_p7 }
  0x3b   : > { %p1774_p2 = pnand %p1773_p1, %p1767_p9 }
  0x3d   : > { %1777 = shalt.err (!%p1774_p2)
}
  0x3e   : > { %1576 = dma.hbm_to_vmem [thread:$0]  (!%p2015_p10), %s2276_s3, 1024, %s2019_s14, [#allocation6], %s1915_s13, %s1915_s13, %s1916_s15  }
  0x3f   : > { %s1778_s20 = scalar_lea.hbm %s2278_s5, 1024 }
  0x40   : > { %p1779_p6 = scmp.ne.s32.totalorder %s2278_s5, %s1778_s20  ;;  %p1785_p5 = scmp.lt.u32.totalorder %s1778_s20, %s2278_s5 }
  0x42   : > { %p1781_p0 = pnand %p1779_p6, %p2031_p12 }
  0x44   : > { %p1782_p3 = pneg %p1781_p0 }
  0x46   : > { %p1787_p7 = pnand %p1785_p5, %p1782_p3 }
  0x48   : > { %1790 = shalt.err (!%p1787_p7)
}
  0x49   : > { %s1791_s11 = scalar_lea.vmem %s253_s16, 1024  ;;  %p1799_p1 = scmp.lt.s32.totalorder %s253_s16, %s253_s16 }
  0x4a   : > { %p1792_p9 = scmp.ne.s32.totalorder %s253_s16, %s1791_s11  ;;  %p1800_p2 = scmp.lt.s32.totalorder %s1791_s11, %s1791_s11 }
  0x4c   : > { %p1794_p11 = pnand %p1792_p9, %p2031_p12  ;;  %p1801_p4 = por %p1800_p2, %p1799_p1 }
  0x4e   : > { %p1795_p13 = pneg %p1794_p11 }
  0x50   : > { %p1802_p8 = pnand %p1801_p4, %p1795_p13 }
  0x52   : > { %1805 = shalt.err (!%p1802_p8)
}
  0x53   : > { %1579 = dma.hbm_to_vmem [thread:$0]  (!%p2015_p10), %s2278_s5, 1024, %s253_s16, [#allocation9], %s1915_s13, %s1915_s13, %s1916_s15  }
  0x54   : > { %s2104_s22 = sadd.s32 1, %s1910_s27   ;;  %s32_s17 = sadd.s32 1, %s1906_s26 }
  0x55   : > { %s29_s12 = ssub.s32 %s1910_s27, %s2104_s22  ;;  %p39_p8 = scmp.ne.s32.totalorder %s1906_s26, %s1902_s25 }
  0x56   : > { %p30_p4 = scmp.eq.s32.totalorder %s29_s12, 0  ;;  %p40_p12 = scmp.eq.s32.totalorder %s1910_s27, 0 }
  0x57   : > { %p1591_p6 = scmp.lt.s32.totalorder %s1910_s27, 4  ;;  %p2291_p3 = scmp.eq.s32.totalorder %s1986_s28, 3 }
  0x58   : > { %s2114_s18 = scalar_select %p30_p4, %s1906_s26, %s32_s17  }
  0x59   : > { %p41_p0 = por %p40_p12, %p39_p8  ;;  %p2118_p5 = por %p2291_p3, %p39_p8 }
  0x5a   : > { %s269_s20 = sand.u32 1, %s1906_s26   ;;  %s1552_s21 = smul.u32 896, %s1910_s27 }
  0x5b   : > { %s1551_s16 = smul.u32 56, %s269_s20  ;;  %p2129_p10 = pnand %p1591_p6, %p41_p0 }
  0x5c   : > { %s2127_s23 = scalar_lea.hbm %s2273_s0, %s1552_s21  ;;  %s2135_s14 = scalar_lea.sflag [#allocation3], %s269_s20 }
  0x5d   : > { %s273_s10 = scalar_lea.vmem [#allocation2], %s1551_s16  ;;  %s1806_s8 = scalar_lea.hbm %s2127_s23, 896 }
  0x5e   : > { %s281_s11 = sshll.u32 %s273_s10, 4  ;;  %p1807_p7 = scmp.ne.s32.totalorder %s2127_s23, %s1806_s8  ;;  %s2133_s11 = int_to_ptr.vmem [resolvable:$true] %s281_s11 }
  0x5f   : > { %p1808_p9 = pneg %p2129_p10  ;;  %s1811_s21 = scalar_lea.hbm %s2273_s0, 3584 }
  0x60   : > { %p1812_p1 = scmp.lt.u32.totalorder %s2127_s23, %s2273_s0  ;;  %p1813_p2 = scmp.lt.u32.totalorder %s1811_s21, %s1806_s8 }
  0x61   : > { %p1809_p11 = pnand %p1808_p9, %p1807_p7  ;;  %p1815_p8 = scmp.lt.u32.totalorder %s1806_s8, %s2127_s23 }
  0x62   : > { %p1814_p4 = por %p1813_p2, %p1812_p1 }
  0x63   : > { %p1810_p13 = pneg %p1809_p11 }
  0x64   : > { %p1816_p12 = por %p1815_p8, %p1814_p4 }
  0x66   : > { %p1817_p6 = pnand %p1816_p12, %p1810_p13 }
  0x68   : > { %1820 = shalt.err (!%p1817_p6)
}
  0x69   : > { %s1821_s20 = scalar_lea.vmem %s2133_s11, 896  ;;  %s1917_s16 = smov [#allocation2]  }
  0x6a   : > { %p1822_p0 = scmp.ne.s32.totalorder %s2133_s11, %s1821_s20  ;;  %s1826_s10 = sshll.u32 %s1917_s16, 4  ;;  %s1827_s10 = int_to_ptr.vmem [resolvable:$false] %s1826_s10 }
  0x6b   : > { %s1828_s12 = scalar_lea.vmem %s1827_s10, 1792  ;;  %p1829_p11 = scmp.lt.s32.totalorder %s2133_s11, %s1827_s10 }
  0x6c   : > { %p1824_p3 = pnand %p1822_p0, %p1808_p9  ;;  %p1830_p1 = scmp.lt.s32.totalorder %s1828_s12, %s1821_s20 }
  0x6e   : > { %p1825_p7 = pneg %p1824_p3  ;;  %p1831_p2 = por %p1830_p1, %p1829_p11 }
  0x70   : > { %p1832_p4 = pnand %p1831_p2, %p1825_p7 }
  0x72   : > { %1835 = shalt.err (!%p1832_p4)
}
  0x73   : > { %s1918_s8 = smov 448   ;;  %s1919_s17 = smov 28  }
  0x74   : > { %1583 = dma.hbm_to_vmem [thread:$0]  (!%p2129_p10), %s2127_s23, 896, %s2133_s11, %s2135_s14, %s1918_s8, %s1918_s8, %s1919_s17  }
  0x75   : > { %p2294_p9 = scmp.ne.s32.totalorder %s2288_s9, 0 }
  0x76   : > { %s2166_s21 = sand.u32 (!%p2294_p9), 1, %s1902_s25   ;;  %p2295_p13 = scmp.ne.s32.totalorder (!%p2294_p9), %s2285_s30, 0 }
  0x77   : > { %293 = sbr.rel (%p2294_p9) target bundleno = 1191 (0x4a7), region = 48  ;;  %s296_s15 = scalar_lea.sflag (!%p2294_p9), [#allocation3], %s2166_s21 }
  0x78   : > { %s1553_s13 = smul.u32 (!%p2294_p9), 56, %s2166_s21 }
  0x7a   : > { %s2170_s20 = scalar_lea.vmem (!%p2294_p9), [#allocation2], %s1553_s13 }
  0x7e   : > { %1881 = dma.done.wait (%p2295_p13), %s296_s15, 896  }
  0x7f   : > { %1883 = vsyncadd (%p2295_p13), %s296_s15, 4294966400  ;;  %p2296_p10 = scmp.eq.s32.totalorder %s1986_s28, 0 }
  0x81   : > { %1885 = dma.done.wait (%p2296_p10), [#allocation6], 7296   ;;  %p2297_p8 = pmov %p2296_p10 }
  0x83   : > { %1887 = vsyncadd (%p2297_p8), [#allocation6], 4294960000  ;;  %p2298_p12 = pmov %p2297_p8 }
  0x84   : > { %p2299_p6 = pmov %p2297_p8 }
  0x85   : > { %1889 = dma.done.wait (%p2298_p12), [#allocation9], 1024  }
  0x86   : > { %1891 = vsyncadd (%p2299_p6), [#allocation9], 4294966272  ;;  %v1639_v0 = vld [vmem:[#allocation5 + $0x40] sm:$0xff]   ;;  %v1643_v4 = vld [vmem:[#allocation5 + $0x48] sm:$0xff]   ;;  %v1920_v38 = vmov 0.0   ;;  %vm1921_vm0 = vmmov 0  }
  0x87   : > { %v1640_v1 = vld [vmem:[#allocation5] sm:$0xff]   ;;  %1419 = vmatprep.subr.bf16.mxu0 %v1639_v0  ;;  %v1644_v5 = vld [vmem:[#allocation5 + $0x8] sm:$0xff]   ;;  %v1647_v8 = vld [vmem:[#allocation5 + $0x50] sm:$0xff]   ;;  %vm787_vm1 = vcmask 130048   ;;  %s1336_s16 = sshll.u32 %s2166_s21, 4  ;;  %s1418_s8 = sshll.u32 %s1986_s28, 8 }
  0x88   : > { %v1641_v2 = vld [vmem:[#allocation5 + $0xc0] sm:$0xff]   ;;  %1420 = vmatpush3.bf16.msra.mxu0 %v1640_v1  ;;  %v1645_v6 = vld [vmem:[#allocation5 + $0xc8] sm:$0xff]   ;;  %v1648_v9 = vld [vmem:[#allocation5 + $0x10] sm:$0xff]   ;;  %s341_s10 = scalar_lea.vmem [#allocation10], %s1336_s16  ;;  %s2230_s15 = scalar_lea.hbm %s2280_s7, %s1418_s8 }
  0x89   : > { %v1642_v3 = vld [vmem:[#allocation5 + $0x80] sm:$0xff]   ;;  %1441 = vmatprep.subr.bf16.mxu1 %v1641_v2  ;;  %1421 = vmatprep.subr.bf16.mxu0 %v1643_v4  ;;  %v1646_v7 = vld [vmem:[#allocation5 + $0x88] sm:$0xff]   ;;  %v1649_v10 = vld [vmem:[#allocation5 + $0xd0] sm:$0xff]   ;;  %s1221_s12 = sshll.u32 %s341_s10, 4  ;;  %s1922_s28 = smov [#allocation10]   ;;  %s2225_s12 = int_to_ptr.vmem [resolvable:$true] %s1221_s12 }
  0x8a   : > { %1442 = vmatpush3.bf16.msra.mxu1 %v1642_v3  ;;  %v1650_v11 = vld [vmem:[#allocation5 + $0x90] sm:$0xff]   ;;  %v1651_v12 = vld [vmem:[#allocation5 + $0x58] sm:$0xff]   ;;  %v1655_v16 = vld [vmem:[#allocation5 + $0x60] sm:$0xff]   ;;  %s1836_s30 = scalar_lea.vmem %s2225_s12, 256  ;;  %s1840_s9 = sshll.u32 %s1922_s28, 4  ;;  %s1841_s9 = int_to_ptr.vmem [resolvable:$false] %s1840_s9 }
  0x8b   : > { %1443 = vmatprep.subr.bf16.mxu1 %v1645_v6  ;;  %v1652_v13 = vld [vmem:[#allocation5 + $0x18] sm:$0xff]   ;;  %v1656_v17 = vld [vmem:[#allocation5 + $0x20] sm:$0xff]   ;;  %v1659_v20 = vld [vmem:[#allocation5 + $0x68] sm:$0xff]   ;;  %p1837_p0 = scmp.ne.s32.totalorder %s2225_s12, %s1836_s30  ;;  %s1842_s23 = scalar_lea.vmem %s1841_s9, 512 }
  0x8c   : > { %1422 = vmatpush3.bf16.msra.mxu0 %v1644_v5  ;;  %v1653_v14 = vld [vmem:[#allocation5 + $0xd8] sm:$0xff]   ;;  %v1657_v18 = vld [vmem:[#allocation5 + $0xe0] sm:$0xff]   ;;  %v1660_v21 = vld [vmem:[#allocation5 + $0x28] sm:$0xff]   ;;  %p1843_p11 = scmp.lt.s32.totalorder %s2225_s12, %s1841_s9  ;;  %p1844_p1 = scmp.lt.s32.totalorder %s1842_s23, %s1836_s30 }
  0x8d   : > { %1423 = vmatprep.subr.bf16.mxu0 %v1647_v8  ;;  %v1654_v15 = vld [vmem:[#allocation5 + $0x98] sm:$0xff]   ;;  %v1658_v19 = vld [vmem:[#allocation5 + $0xa0] sm:$0xff]   ;;  %v1661_v22 = vld [vmem:[#allocation5 + $0xe8] sm:$0xff]   ;;  %p1838_p3 = pnand %p1837_p0, %p2118_p5 }
  0x8e   : > { %1444 = vmatpush3.bf16.msra.mxu1 %v1646_v7  ;;  %v1662_v23 = vld [vmem:[#allocation5 + $0xa8] sm:$0xff]   ;;  %v1663_v24 = vld [vmem:[#allocation5 + $0x70] sm:$0xff]   ;;  %v1667_v28 = vld [vmem:[#allocation5 + $0x78] sm:$0xff]   ;;  %p1845_p2 = por %p1844_p1, %p1843_p11 }
  0x8f   : > { %1445 = vmatprep.subr.bf16.mxu1 %v1649_v10  ;;  %v1664_v25 = vld [vmem:[#allocation5 + $0x30] sm:$0xff]   ;;  %v1668_v29 = vld [vmem:[#allocation5 + $0x38] sm:$0xff]   ;;  %v1674_v34 = vld [vmem:[#allocation5 + $0x140] sm:$0xff]   ;;  %p1839_p7 = pneg %p1838_p3 }
  0x90   : > { %1424 = vmatpush3.bf16.msra.mxu0 %v1648_v9  ;;  %v1665_v26 = vld [vmem:[#allocation5 + $0xf0] sm:$0xff]   ;;  %v1669_v30 = vld [vmem:[#allocation5 + $0xf8] sm:$0xff]   ;;  %v1678_v37 = vld [vmem:[#allocation5 + $0x100] sm:$0xff]  }
  0x91   : > { %1425 = vmatprep.subr.bf16.mxu0 %v1651_v12  ;;  %v1666_v27 = vld [vmem:[#allocation5 + $0xb0] sm:$0xff]   ;;  %v1673_v33 = vld [vmem:[#allocation5 + $0xb8] sm:$0xff]   ;;  %v1679_v39 = vld [vmem:[#allocation5 + $0x148] sm:$0xff]   ;;  %p1846_p4 = pnand %p1845_p2, %p1839_p7 }
  0x92   : > { %1446 = vmatpush3.bf16.msra.mxu1 %v1650_v11  ;;  %v1670_v31 = vld [vmem:[%s2170_s20] ss:$28 sps:$4 sm:$0xff]   ;;  %v1675_v35 = vld [vmem:[%s2170_s20 + $0x8] ss:$28 sps:$4 sm:$0xff]   ;;  %v1696_v50 = vld [vmem:[%s2170_s20 + $0x14] ss:$28 sps:$4 sm:$0xff]  }
  0x93   : > { %1447 = vmatprep.subr.bf16.mxu1 %v1653_v14  ;;  %v1672_v32 = vld [vmem:[%s2170_s20 + $0x4] ss:$28 sps:$4 sm:$0xff]   ;;  %v1677_v36 = vld [vmem:[%s2170_s20 + $0xc] ss:$28 sps:$4 sm:$0xff]   ;;  %v1685_v45 = vld [vmem:[#allocation5 + $0x160] sm:$0xff]  }
  0x94   : > { %1426 = vmatpush3.bf16.msra.mxu0 %v1652_v13  ;;  %823 = vmatprep.mubr.bf16.mxu0 %v1672_v32  ;;  %v1680_v40 = vld [vmem:[#allocation5 + $0x108] sm:$0xff]   ;;  %v1681_v41 = vld [vmem:[#allocation5 + $0x150] sm:$0xff]   ;;  %v1683_v43 = vld [vmem:[#allocation5 + $0x158] sm:$0xff]  }
  0x95   : > { %1427 = vmatprep.subr.bf16.mxu0 %v1655_v16  ;;  %864 = vmatprep.mubr.bf16.mxu1 %v1677_v36  ;;  %v1682_v42 = vld [vmem:[#allocation5 + $0x110] sm:$0xff]   ;;  %v1684_v44 = vld [vmem:[#allocation5 + $0x118] sm:$0xff]   ;;  %v1686_v46 = vld [vmem:[#allocation5 + $0x120] sm:$0xff]  }
  0x96   : > { %1448 = vmatpush3.bf16.msra.mxu1 %v1654_v15  ;;  %v1687_v47 = vld [vmem:[#allocation5 + $0x168] sm:$0xff]   ;;  %v1693_v48 = vld [vmem:[#allocation5 + $0x180] sm:$0xff]   ;;  %v1689_v51 = vld [vmem:[#allocation5 + $0x170] sm:$0xff]  }
  0x97   : > { %1449 = vmatprep.subr.bf16.mxu1 %v1657_v18  ;;  %v1688_v49 = vld [vmem:[#allocation5 + $0x128] sm:$0xff]   ;;  %v1690_v53 = vld [vmem:[#allocation5 + $0x130] sm:$0xff]   ;;  %v1691_v54 = vld [vmem:[#allocation5 + $0x178] sm:$0xff]  }
  0x98   : > { %1428 = vmatpush3.bf16.msra.mxu0 %v1656_v17  ;;  %v1697_v52 = vld [vmem:[%s2170_s20 + $0x18] ss:$28 sps:$4 sm:$0xff]   ;;  %v1694_v56 = vld [vmem:[%s2170_s20 + $0x10] ss:$28 sps:$4 sm:$0xff]   ;;  %v1337_v8 = vld [vmem:[%s2275_s2] ss:$0 sm:$0xff] }
  0x99   : > { %1429 = vmatprep.subr.bf16.mxu0 %v1659_v20  ;;  %v1692_v55 = vld [vmem:[#allocation5 + $0x138] sm:$0xff]   ;;  %v1698_v57 = vld [vmem:[#allocation7] sm:$0xff]   ;;  %v1699_v58 = vld [vmem:[#allocation7 + $0x8] sm:$0xff]   ;;  %s1208_s20 = scalar_lea.sflag [#allocation4], %s2166_s21 }
  0x9a   : > { %1450 = vmatpush3.bf16.msra.mxu1 %v1658_v19  ;;  %v1700_v59 = vld [vmem:[#allocation7 + $0x10] sm:$0xff]   ;;  %v1701_v60 = vld [vmem:[#allocation7 + $0x18] sm:$0xff]   ;;  %v1702_v61 = vld [vmem:[#allocation7 + $0x20] sm:$0xff]  }
  0x9b   : > { %1451 = vmatprep.subr.bf16.mxu1 %v1661_v22  ;;  %v1703_v62 = vld [vmem:[#allocation7 + $0x28] sm:$0xff]   ;;  %v1704_v63 = vld [vmem:[#allocation7 + $0x30] sm:$0xff]   ;;  %v1705_v0 = vld [vmem:[#allocation7 + $0x38] sm:$0xff]  }
  0x9c   : > { %1430 = vmatpush3.bf16.msra.mxu0 %v1660_v21  ;;  %v1706_v1 = vld [vmem:[#allocation8] sm:$0xff]   ;;  %v1707_v2 = vld [vmem:[#allocation8 + $0x8] sm:$0xff]   ;;  %v1708_v3 = vld [vmem:[#allocation8 + $0x10] sm:$0xff]  }
  0x9d   : > { %1431 = vmatprep.subr.bf16.mxu0 %v1663_v24  ;;  %v1709_v4 = vld [vmem:[#allocation8 + $0x18] sm:$0xff]   ;;  %v1710_v5 = vld [vmem:[#allocation8 + $0x20] sm:$0xff]   ;;  %v1711_v6 = vld [vmem:[#allocation8 + $0x28] sm:$0xff]  }
  0x9e   : > { %1452 = vmatpush3.bf16.msra.mxu1 %v1662_v23 }
  0x9f   : > { %1453 = vmatprep.subr.bf16.mxu1 %v1665_v26 }
  0xa0   : > { %1432 = vmatpush3.bf16.msra.mxu0 %v1664_v25 }
  0xa1   : > { %1433 = vmatprep.subr.bf16.mxu0 %v1667_v28 }
  0xa2   : > { %1454 = vmatpush3.bf16.msra.mxu1 %v1666_v27 }
  0xa3   : > { %1455 = vmatprep.subr.bf16.mxu1 %v1669_v30 }
  0xa4   : > { %1434 = vmatpush3.bf16.msra.mxu0 %v1668_v29 }
  0xa5   : > { %1463 = vmatprep.subr.bf16.mxu0 %v1674_v34 }
  0xa6   : > { %1456 = vmatpush3.bf16.msra.mxu1 %v1673_v33 }
  0xa7   : > { %824 = vmatmul.mubr.bf16.vlgmr.msra.gmra.mrb[0].mxu0 %v1670_v31  ;;  %1505 = vmatprep.subr.bf16.mxu1 %v1920_v38 }
  0xa8   : > { %1464 = vmatpush3.bf16.msra.mxu0 %v1678_v37  ;;  %905 = vmatprep.mubr.bf16.mxu0 %v1696_v50 }
  0xa9   : > { %865 = vmatmul.mubr.bf16.vlgmr.msra.gmra.mrb[0].mxu1 %v1675_v35  ;;  %1465 = vmatprep.subr.bf16.mxu0 %v1679_v39 }
  0xaa   : > { %1507 = vmatprep.mubr.msk.bf16.mxu1 %vm1921_vm0, %v1920_v38  ;;  %1506 = vmatpush3.bf16.msra.mxu1 %v1693_v48 }
  0xab   : > { %1511 = vmatprep.subr.bf16.mxu1 %v1920_v38 }
  0xac   : > { %1466 = vmatpush3.bf16.msra.mxu0 %v1680_v40 }
  0xad   : > { %1467 = vmatprep.subr.bf16.mxu0 %v1681_v41 }
  0xb0   : > { %1468 = vmatpush3.bf16.msra.mxu0 %v1682_v42  ;;  %v1712_v42 = vld [vmem:[#allocation8 + $0x30] sm:$0xff]  }
  0xb1   : > { %1469 = vmatprep.subr.bf16.mxu0 %v1683_v43  ;;  %1508 = vmatmul.mubr.msk.bf16.vlgmr.msra.gmra.mrb[4].mxu1 %vm787_vm1, %v1697_v52  ;;  %v1713_v43 = vld [vmem:[#allocation8 + $0x38] sm:$0xff]  }
  0xb2   : > { %1527 = vmatprep.mubr.msk.bf16.mxu1 %vm1921_vm0, %v1920_v38  ;;  %1512 = vmatpush3.bf16.msra.mxu1 %v1698_v57 }
  0xb3   : > { %1513 = vmatprep.subr.bf16.mxu1 %v1920_v38 }
  0xb4   : > { %1470 = vmatpush3.bf16.msra.mxu0 %v1684_v44  ;;  %v1395_v44 = vld [vmem:[%s2277_s4] ss:$0 sm:$0xff] }
  0xb5   : > { %1471 = vmatprep.subr.bf16.mxu0 %v1685_v45 }
  0xb6   : > { %1514 = vmatpush3.bf16.msra.mxu1 %v1699_v58 }
  0xb7   : > { %1515 = vmatprep.subr.bf16.mxu1 %v1920_v38 }
  0xb8   : > { %1472 = vmatpush3.bf16.msra.mxu0 %v1686_v46 }
  0xb9   : > { %1473 = vmatprep.subr.bf16.mxu0 %v1687_v47 }
  0xba   : > { %1516 = vmatpush3.bf16.msra.mxu1 %v1700_v59 }
  0xbb   : > { %1517 = vmatprep.subr.bf16.mxu1 %v1920_v38 }
  0xbc   : > { %1474 = vmatpush3.bf16.msra.mxu0 %v1688_v49 }
  0xbd   : > { %1475 = vmatprep.subr.bf16.mxu0 %v1689_v51 }
  0xbe   : > { %1518 = vmatpush3.bf16.msra.mxu1 %v1701_v60 }
  0xbf   : > { %1519 = vmatprep.subr.bf16.mxu1 %v1920_v38 }
  0xc0   : > { %1476 = vmatpush3.bf16.msra.mxu0 %v1690_v53 }
  0xc1   : > { %1477 = vmatprep.subr.bf16.mxu0 %v1691_v54 }
  0xc2   : > { %1520 = vmatpush3.bf16.msra.mxu1 %v1702_v61 }
  0xc3   : > { %1521 = vmatprep.subr.bf16.mxu1 %v1920_v38 }
  0xc4   : > { %1478 = vmatpush3.bf16.msra.mxu0 %v1692_v55 }
  0xc5   : > { %1531 = vmatprep.subr.bf16.mxu0 %v1920_v38 }
  0xc6   : > { %1522 = vmatpush3.bf16.msra.mxu1 %v1703_v62 }
  0xc7   : > { %906 = vmatmul.mubr.bf16.vlgmr.msra.gmra.mrb[4].mxu0 %v1694_v56  ;;  %1523 = vmatprep.subr.bf16.mxu1 %v1920_v38 }
  0xc8   : > { %1547 = vmatprep.mubr.msk.bf16.mxu0 %vm1921_vm0, %v1920_v38  ;;  %1532 = vmatpush3.bf16.msra.mxu0 %v1706_v1 }
  0xc9   : > { %1533 = vmatprep.subr.bf16.mxu0 %v1920_v38 }
  0xca   : > { %1524 = vmatpush3.bf16.msra.mxu1 %v1704_v63 }
  0xcb   : > { %1525 = vmatprep.subr.bf16.mxu1 %v1920_v38 }
  0xcc   : > { %1534 = vmatpush3.bf16.msra.mxu0 %v1707_v2 }
  0xcd   : > { %1535 = vmatprep.subr.bf16.mxu0 %v1920_v38 }
  0xce   : > { %1526 = vmatpush3.bf16.msra.mxu1 %v1705_v0 }
  0xd0   : > { %1536 = vmatpush3.bf16.msra.mxu0 %v1708_v3 }
  0xd1   : > { %1537 = vmatprep.subr.bf16.mxu0 %v1920_v38 }
  0xd4   : > { %1538 = vmatpush3.bf16.msra.mxu0 %v1709_v4 }
  0xd5   : > { %1539 = vmatprep.subr.bf16.mxu0 %v1920_v38 }
  0xd8   : > { %1540 = vmatpush3.bf16.msra.mxu0 %v1710_v5 }
  0xd9   : > { %1541 = vmatprep.subr.bf16.mxu0 %v1920_v38 }
  0xdc   : > { %1542 = vmatpush3.bf16.msra.mxu0 %v1711_v6 }
  0xdd   : > { %1543 = vmatprep.subr.bf16.mxu0 %v1920_v38 }
  0xe0   : > { %1544 = vmatpush3.bf16.msra.mxu0 %v1712_v42 }
  0xe1   : > { %1545 = vmatprep.subr.bf16.mxu0 %v1920_v38  ;;  %v1404_v38 = vld [vmem:[%s2279_s6] ss:$0 sm:$0xff] }
  0xe4   : > { %1546 = vmatpush3.bf16.msra.mxu0 %v1713_v43 }
 0x17a   : > { %v1435_v7 = vpop.f32.mrb[0].mxu0 }
 0x17b   : > { %v1436_v9 = vpop.f32.mrb[1].mxu0 }
 0x17c   : > { %v1437_v10 = vadd.f32 %v1436_v9, %v1435_v7  ;;  %v1438_v11 = vpop.f32.mrb[2].mxu0  ;;  %v1457_v12 = vpop.f32.mrb[0].mxu1 }
 0x17d   : > { %v1439_v13 = vpop.f32.mrb[3].mxu0  ;;  %v1458_v16 = vpop.f32.mrb[1].mxu1 }
 0x17e   : > { %v826_v14 = vadd.f32 %v1437_v10, %v1337_v8  ;;  %v1440_v15 = vadd.f32 %v1439_v13, %v1438_v11  ;;  %v1459_v17 = vadd.f32 %v1458_v16, %v1457_v12  ;;  %v1460_v18 = vpop.f32.mrb[2].mxu1 }
 0x17f   : > { %v1461_v20 = vpop.f32.mrb[3].mxu1 }
 0x180   : > { %v829_v19 = vadd.f32 %v1440_v15, %v1337_v8  ;;  %v867_v21 = vadd.f32 %v1459_v17, %v826_v14  ;;  %v1462_v22 = vadd.f32 %v1461_v20, %v1460_v18 }
 0x182   : > { %v870_v23 = vadd.f32 %v1462_v22, %v829_v19 }
 0x184   : > { %v948_v24 = vpop.f32.mrb[4].mxu1 }
 0x185   : > { %v1509_v25 = vpop.f32.mrb[5].mxu1 }
 0x186   : > { %v951_v26 = vpop.f32.mrb[6].mxu1 }
 0x187   : > { %v1510_v27 = vpop.f32.mrb[7].mxu1 }
 0x19a   : > { %v1479_v28 = vpop.f32.mrb[4].mxu0 }
 0x19b   : > { %v1480_v29 = vpop.f32.mrb[5].mxu0 }
 0x19c   : > { %v1481_v30 = vadd.f32 %v1480_v29, %v1479_v28  ;;  %v1482_v31 = vpop.f32.mrb[6].mxu0 }
 0x19d   : > { %v1483_v32 = vpop.f32.mrb[7].mxu0 }
 0x19e   : > { %v908_v33 = vadd.f32 %v1481_v30, %v867_v21  ;;  %v1484_v34 = vadd.f32 %v1483_v32, %v1482_v31 }
 0x1a0   : > { %v949_v35 = vadd.f32 %v948_v24, %v908_v33  ;;  %v911_v36 = vadd.f32 %v1484_v34, %v870_v23 }
 0x1a2   : > { %v952_v37 = vadd.f32 %v951_v26, %v911_v36  ;;  %v955_v39 = vmax.f32 %v949_v35, 0.0 }
 0x1a4   : > { %v956_v40 = vmax.f32 %v952_v37, 0.0 }
 0x1a6   : > { %v957_v41 = vpack.c.bf16 %v956_v40, %v955_v39 }
 0x1a8   : > { %1528 = vmatmul.mubr.bf16.vlgmr.msra.gmra.mrb[8].mxu1 %v957_v41 }
 0x27b   : > { %v1063_v45 = vpop.f32.mrb[8].mxu1 }
 0x27c   : > { %v1064_v46 = vadd.f32 %v1395_v44, %v1063_v45  ;;  %v1529_v47 = vpop.f32.mrb[9].mxu1 }
 0x27d   : > { %v1066_v48 = vpop.f32.mrb[10].mxu1 }
 0x27e   : > { %v1067_v49 = vadd.f32 %v1395_v44, %v1066_v48  ;;  %v1530_v50 = vpop.f32.mrb[11].mxu1  ;;  %v1070_v51 = vmax.f32 %v1064_v46, 0.0 }
 0x280   : > { %v1071_v52 = vmax.f32 %v1067_v49, 0.0 }
 0x282   : > { %v1072_v53 = vpack.c.bf16 %v1071_v52, %v1070_v51 }
 0x284   : > { %1548 = vmatmul.mubr.bf16.vlgmr.msra.gmra.mrb[8].mxu0 %v1072_v53 }
 0x357   : > { %v1178_v54 = vpop.f32.mrb[8].mxu0 }
 0x358   : > { %v1179_v55 = vadd.f32 %v1404_v38, %v1178_v54  ;;  %v1549_v56 = vpop.f32.mrb[9].mxu0 }
 0x359   : > { %v1181_v57 = vpop.f32.mrb[10].mxu0 }
 0x35a   : > { %1185 = vmax.xlane.f32.xlu0 %v1179_v55  ;;  %v1550_v58 = vpop.f32.mrb[11].mxu0  ;;  %v1182_v59 = vadd.f32 %v1404_v38, %v1181_v57 }
 0x35e   : > { %1187 = vmax.xlane.f32.xlu0 %v1182_v59 }
 0x3e7   : > { %v1186_v60 = vpop.xlane.xlu0 %1185 }
 0x3e8   : > { %v1189_v61 = vsub.f32 %v1179_v55, %v1186_v60 }
 0x3ea   : > { %v1191_v62 = vmul.f32 1.442695, %v1189_v61 }
 0x3eb   : > { %v1188_v63 = vpop.xlane.xlu0 %1187 }
 0x3ec   : > { %v1190_v0 = vsub.f32 %v1182_v59, %v1188_v63  ;;  %1714 = vpow2.f32 %v1191_v62 }
 0x3ee   : > { %v1193_v1 = vmul.f32 1.442695, %v1190_v0 }
 0x3f0   : > { %1716 = vpow2.f32 %v1193_v1 }
 0x3f6   : > { %v1715_v2 = vpop.eup %1714 }
 0x3f7   : > { %1195 = vadd.xlane.f32.xlu1 %v1715_v2 }
 0x3fa   : > { %v1717_v3 = vpop.eup %1716 }
 0x3fb   : > { %1197 = vadd.xlane.f32.xlu1 %v1717_v3 }
 0x484   : > { %v1196_v4 = vpop.xlane.xlu1 %1195 }
 0x485   : > { %1718 = vlog2.f32 %v1196_v4 }
 0x488   : > { %v1198_v5 = vpop.xlane.xlu1 %1197 }
 0x489   : > { %1720 = vlog2.f32 %v1198_v5 }
 0x48f   : > { %v1719_v6 = vpop.eup %1718 }
 0x490   : > { %v1200_v7 = vmul.f32 0.6931472, %v1719_v6 }
 0x492   : > { %v1203_v8 = vsub.f32 %v1189_v61, %v1200_v7 }
 0x493   : > { %v1721_v9 = vpop.eup %1720 }
 0x494   : > { %1205 = vst [vmem:[%s341_s10] sm:$0xff] %v1203_v8  ;;  %v1202_v10 = vmul.f32 0.6931472, %v1721_v9 }
 0x496   : > { %v1204_v11 = vsub.f32 %v1190_v0, %v1202_v10 }
 0x498   : > { %1206 = vst [vmem:[%s341_s10 + $0x8] sm:$0xff] %v1204_v11 }
 0x499   : > { %1849 = shalt.err (!%p1846_p4)
}
 0x49a   : > { %s1850_s29 = scalar_lea.hbm %s2230_s15, 256  ;;  %s1854_s16 = scalar_lea.hbm %s2280_s7, 1024 }
 0x49b   : > { %p1851_p9 = scmp.ne.s32.totalorder %s2230_s15, %s1850_s29  ;;  %p1855_p8 = scmp.lt.u32.totalorder %s2230_s15, %s2280_s7 }
 0x49c   : > { %p1856_p12 = scmp.lt.u32.totalorder %s1854_s16, %s1850_s29  ;;  %p1858_p0 = scmp.lt.u32.totalorder %s1850_s29, %s2230_s15 }
 0x49d   : > { %p1852_p13 = pnand %p1851_p9, %p2118_p5 }
 0x49e   : > { %p1857_p6 = por %p1856_p12, %p1855_p8 }
 0x49f   : > { %p1853_p10 = pneg %p1852_p13 }
 0x4a0   : > { %p1859_p3 = por %p1858_p0, %p1857_p6 }
 0x4a2   : > { %p1860_p7 = pnand %p1859_p3, %p1853_p10 }
 0x4a4   : > { %1863 = shalt.err (!%p1860_p7)
}
 0x4a5   : > { %s1923_s17 = smov 128   ;;  %s1924_s13 = smov 8  }
 0x4a6   : > { %1568 = dma.vmem_to_hbm [thread:$0]  (%p2118_p5), %s2225_s12, 256, %s2230_s15, %s1208_s20, %s1923_s17, %s1923_s17, %s1924_s13  }
 0x4a7 PF: > { %s2300_s30 = sld [smem:[#allocation15_spill]]  ;;  %p1595_p11 = scmp.ge.s32.totalorder %s1910_s27, 2 }
 0x4a8   : > { %s1236_s28 = sand.u32 1, %s1898_s24  }
 0x4a9   : > { %s1237_s9 = scalar_lea.sflag [#allocation4], %s1236_s28 }
 0x4ad   : > { %p2301_p1 = scmp.ne.s32.totalorder %s2300_s30, 0 }
 0x4af   : > { %p1585_p2 = pnand %p1595_p11, %p2301_p1 }
 0x4b1   : > { %1893 = dma.done.wait (!%p1585_p2), %s1237_s9, 256  }
 0x4b2   : > { %1895 = vsyncadd (!%p1585_p2), %s1237_s9, 4294967040  ;;  %p22_p4 = scmp.ge.s32.totalorder %s2104_s22, 6   ;;  %s2302_s24 = smov %s1902_s25 }
 0x4b3   : > { %s2303_s25 = smov %s1906_s26  ;;  %s2304_s26 = smov %s2114_s18 }
 0x4b4   : > { %s2305_s27 = smov %s2104_s22  ;;  %24 = sbr.rel (!%p22_p4) target bundleno = 7 (0x7), region = 105 }
 0x4bb   :  { %1242 = vsyncpa [#allocation3], 1 }
 0x4bc   :  { %1244 = vsyncpa [#allocation3 + $0x1], 1 }
 0x4bd   :  { %1245 = vsyncpa [#allocation6], 1 }
 0x4be   :  { %1246 = vsyncpa [#allocation9], 1 }
 0x4bf   :  { %1247 = vsyncpa [#allocation4], 1 }
 0x4c0   :  { %1249 = vsyncpa [#allocation4 + $0x1], 1 }

</bundles_post_ra>
